<compile_context>
chip_gen: v6e
topology: v6e:2x2x1
jax: 0.10.0
libtpu: 0.0.40
codegen_flags: <defaults>
</compile_context>

<pallas_src>
import jax
import jax.numpy as jnp
from jax import lax
from jax.experimental import pallas as pl
from jax.experimental.pallas import tpu as pltpu

_DMA_DEPTH = 16                 # in-flight row DMAs per stream (fallback path)
_MAX_ROWS_PER_STEP = 1024       # TB cap (2 outs * 2 bufs * 1024 * 128 * 4B = 2 MiB)
_RESIDENT_VMEM_BUDGET = 40 * 1024 * 1024   # conservative across v5e/v6e/v7x


def _round_up(x, m):
    return ((x + m - 1) // m) * m


# --------------------------- resident-table path ---------------------------

def _make_resident_kernel(tb):
    """Tables live in VMEM; gather is per-row dynamic slice VMEM->VMEM."""

    def kernel(uids_ref, iids_ref,            # scalar-prefetch ids (SMEM)
               user_tab_ref, item_tab_ref,    # resident VMEM tables
               user_out_ref, item_out_ref):   # (tb, E) pipelined out tiles
        base = pl.program_id(0) * tb

        def body(r, carry):
            u = uids_ref[base + r]
            it = iids_ref[base + r]
            user_out_ref[pl.ds(r, 1), :] = user_tab_ref[pl.ds(u, 1), :]
            item_out_ref[pl.ds(r, 1), :] = item_tab_ref[pl.ds(it, 1), :]
            return carry

        lax.fori_loop(0, tb, body, 0, unroll=8)

    return kernel


# --------------------------- manual-DMA gather path -------------------------

def _make_dma_gather_kernel(tb, depth):
    """Tables stay in HBM; per-row DMAs land directly in the output tiles."""

    def kernel(uids_ref, iids_ref,            # scalar-prefetch ids (SMEM)
               user_tab_hbm, item_tab_hbm,    # raw HBM refs (pl.ANY)
               user_out_ref, item_out_ref,    # (tb, E) pipelined out tiles
               sems):                         # DMA semaphores (2, depth)
        base = pl.program_id(0) * tb

        def row_copy(table_hbm, out_ref, row, r_dst, stream, slot):
            return pltpu.make_async_copy(
                table_hbm.at[pl.ds(row, 1), :],
                out_ref.at[pl.ds(r_dst, 1), :],
                sems.at[stream, slot])

        def wait(r):
            # Dummy (index-0) descriptors: only the semaphore + transfer size
            # matter; every copy in a stream has identical (1, E) size.
            slot = r % depth
            row_copy(user_tab_hbm, user_out_ref, 0, 0, 0, slot).wait()
            row_copy(item_tab_hbm, item_out_ref, 0, 0, 1, slot).wait()

        def issue(r, carry):
            # Hoist SMEM id reads above the wait: .wait() breaks sst->sld
            # forwarding and would stall these scalar loads.
            uid = uids_ref[base + r]
            iid = iids_ref[base + r]
            slot = r % depth

            @pl.when(r >= depth)
            def _():
                wait(r - depth)     # free the slot we are about to reuse

            row_copy(user_tab_hbm, user_out_ref, uid, r, 0, slot).start()
            row_copy(item_tab_hbm, item_out_ref, iid, r, 1, slot).start()
            return carry

        lax.fori_loop(0, tb, issue, 0, unroll=4)

        def drain(j, carry):
            wait(tb - depth + j)    # wait the last `depth` in-flight copies
            return carry

        lax.fori_loop(0, depth, drain, 0, unroll=4)

    return kernel


# --------------------------------- wrapper ----------------------------------

def bpr_forward(user_ids, item_ids, user_table, item_table,
                resident_vmem_budget=_RESIDENT_VMEM_BUDGET):
    """Equivalent of BPR.forward: returns (user_e, item_e)."""
    batch = user_ids.shape[0]
    n_users, emb_u = user_table.shape
    n_items, emb_i = item_table.shape

    # Clamp ids (nn.Embedding errors on OOB; we clamp for slice/DMA safety).
    user_ids = jnp.clip(user_ids.astype(jnp.int32), 0, n_users - 1)
    item_ids = jnp.clip(item_ids.astype(jnp.int32), 0, n_items - 1)

    # Rows per grid step: multiple of 8 (sublane-dense), capped, and chosen so
    # the grid has >= 2 steps when batch allows (v7x megacore sharding).
    tb = min(_MAX_ROWS_PER_STEP, _round_up(pl.cdiv(batch, 2), 8))
    padded_batch = _round_up(batch, tb)
    pad = padded_batch - batch
    if pad:
        user_ids = jnp.pad(user_ids, (0, pad))
        item_ids = jnp.pad(item_ids, (0, pad))
    n_steps = padded_batch // tb

    bytes_u = user_table.dtype.itemsize
    bytes_i = item_table.dtype.itemsize
    out_tile_bytes = 2 * 2 * tb * max(emb_u * bytes_u, emb_i * bytes_i)
    table_bytes = 2 * (n_users * emb_u * bytes_u + n_items * emb_i * bytes_i)
    resident_need = table_bytes + out_tile_bytes + (2 << 20)

    out_shapes = (
        jax.ShapeDtypeStruct((padded_batch, emb_u), user_table.dtype),
        jax.ShapeDtypeStruct((padded_batch, emb_i), item_table.dtype),
    )

    if resident_need <= resident_vmem_budget:
        # -------- fast path: tables resident in VMEM, gather in VMEM --------
        kernel = _make_resident_kernel(tb)
        grid_spec = pltpu.PrefetchScalarGridSpec(
            num_scalar_prefetch=2,                 # user_ids, item_ids -> SMEM
            grid=(n_steps,),
            in_specs=[
                pl.BlockSpec((n_users, emb_u), lambda b, u, i: (0, 0)),
                pl.BlockSpec((n_items, emb_i), lambda b, u, i: (0, 0)),
            ],
            out_specs=[
                pl.BlockSpec((tb, emb_u), lambda b, u, i: (b, 0)),
                pl.BlockSpec((tb, emb_i), lambda b, u, i: (b, 0)),
            ],
        )
        bytes_accessed = (n_users * emb_u * bytes_u + n_items * emb_i * bytes_i
                          + padded_batch * (emb_u * bytes_u + emb_i * bytes_i)
                          + 2 * padded_batch * 4)
        compiler_params = pltpu.CompilerParams(
            dimension_semantics=("parallel",),
            vmem_limit_bytes=int(min(max(resident_need + (4 << 20), 32 << 20),
                                     100 << 20)),
        )
    else:
        # ------- fallback: per-row HBM DMA gather (deep pipelined) ----------
        depth = min(tb, _DMA_DEPTH)
        kernel = _make_dma_gather_kernel(tb, depth)
        grid_spec = pltpu.PrefetchScalarGridSpec(
            num_scalar_prefetch=2,
            grid=(n_steps,),
            in_specs=[
                pl.BlockSpec(memory_space=pl.ANY),     # user table in HBM
                pl.BlockSpec(memory_space=pl.ANY),     # item table in HBM
            ],
            out_specs=[
                pl.BlockSpec((tb, emb_u), lambda b, u, i: (b, 0)),
                pl.BlockSpec((tb, emb_i), lambda b, u, i: (b, 0)),
            ],
            scratch_shapes=[pltpu.SemaphoreType.DMA((2, depth))],
        )
        bytes_accessed = 2 * padded_batch * (emb_u * bytes_u + emb_i * bytes_i)
        compiler_params = pltpu.CompilerParams(
            dimension_semantics=("parallel",))

    cost = pl.CostEstimate(flops=0, transcendentals=0,
                           bytes_accessed=int(bytes_accessed))

    user_e, item_e = pl.pallas_call(
        kernel,
        grid_spec=grid_spec,
        out_shape=out_shapes,
        compiler_params=compiler_params,
        cost_estimate=cost,
    )(user_ids, item_ids, user_table, item_table)

    if pad:
        user_e = user_e[:batch]
        item_e = item_e[:batch]
    return user_e, item_e


if __name__ == "__main__":
    # Small, deterministic config consistent with BPR.__init__.
    embedding_size = 128   # lane-aligned
    n_users = 64
    n_items = 96

    key = jax.random.PRNGKey(0)
    k_u, k_i, k_uid, k_iid = jax.random.split(key, 4)

    # nn.init.normal_(weight, 0, 0.01)
    user_table = (0.01 * jax.random.normal(k_u, (n_users, embedding_size))
                  ).astype(jnp.float32)
    item_table = (0.01 * jax.random.normal(k_i, (n_items, embedding_size))
                  ).astype(jnp.float32)

    def check(batch, force_dma_path):
        ku, ki = jax.random.split(jax.random.fold_in(key, batch + force_dma_path), 2)
        user_ids = jax.random.randint(ku, (batch,), 0, n_users, dtype=jnp.int32)
        item_ids = jax.random.randint(ki, (batch,), 0, n_items, dtype=jnp.int32)
        budget = 0 if force_dma_path else _RESIDENT_VMEM_BUDGET
        user_e, item_e = bpr_forward(user_ids, item_ids, user_table, item_table,
                                     resident_vmem_budget=budget)
        jax.block_until_ready((user_e, item_e))
        ref_user_e = jnp.take(user_table, user_ids, axis=0)
        ref_item_e = jnp.take(item_table, item_ids, axis=0)
        assert user_e.shape == (batch, embedding_size)
        assert item_e.shape == (batch, embedding_size)
        assert jnp.allclose(user_e, ref_user_e)
        assert jnp.allclose(item_e, ref_item_e)

    check(batch=8, force_dma_path=0)    # resident path, single grid step
    check(batch=20, force_dma_path=0)   # resident path, multi-step + padding
    check(batch=20, force_dma_path=1)   # DMA-gather fallback path

    print("KERNEL_OK")
</pallas_src>

<mosaic_0001>
module attributes {stable_mosaic.version = 11 : i64} {
  func.func @kernel(%arg0: i32, %arg1: memref<8xi32, #tpu.memory_space<smem>>, %arg2: memref<8xi32, #tpu.memory_space<smem>>, %arg3: memref<64x128xf32, #tpu.memory_space<vmem>>, %arg4: memref<96x128xf32, #tpu.memory_space<vmem>>, %arg5: memref<8x128xf32, #tpu.memory_space<vmem>>, %arg6: memref<8x128xf32, #tpu.memory_space<vmem>>) attributes {dimension_semantics = [#tpu.dimension_semantics<parallel>], iteration_bounds = array<i64: 1>, scalar_prefetch = 2 : i64, scratch_operands = 0 : i64, tpu.core_type = #tpu.core_type<tc>, window_params = [{pipeline_mode = #tpu.pipeline_mode<synchronous>, transform_indices = @transform_0, window_bounds = array<i64: 64, 128>}, {pipeline_mode = #tpu.pipeline_mode<synchronous>, transform_indices = @transform_1, window_bounds = array<i64: 96, 128>}, {transform_indices = @transform_2, window_bounds = array<i64: 8, 128>}, {transform_indices = @transform_3, window_bounds = array<i64: 8, 128>}]} {
    %c8_i32 = arith.constant 8 : i32
    %0 = arith.muli %arg0, %c8_i32 : i32
    %c0_i32 = arith.constant 0 : i32
    %1 = arith.addi %0, %c0_i32 : i32
    %2 = arith.index_cast %1 : i32 to index
    %3 = memref.load %arg1[%2] : memref<8xi32, #tpu.memory_space<smem>>
    %4 = arith.addi %0, %c0_i32 : i32
    %5 = arith.index_cast %4 : i32 to index
    %6 = memref.load %arg2[%5] : memref<8xi32, #tpu.memory_space<smem>>
    %7 = arith.index_cast %3 : i32 to index
    %c0 = arith.constant 0 : index
    %8 = vector.load %arg3[%7, %c0] : memref<64x128xf32, #tpu.memory_space<vmem>>, vector<1x128xf32>
    %9 = arith.index_cast %c0_i32 : i32 to index
    %c0_0 = arith.constant 0 : index
    %10 = vector.load %arg5[%9, %c0_0] : memref<8x128xf32, #tpu.memory_space<vmem>>, vector<1x128xf32>
    tpu.vector_store %arg5[%9, %c0_0], %8 {strides = array<i32>} : memref<8x128xf32, #tpu.memory_space<vmem>>, vector<1x128xf32>,
    %11 = arith.index_cast %6 : i32 to index
    %c0_1 = arith.constant 0 : index
    %12 = vector.load %arg4[%11, %c0_1] : memref<96x128xf32, #tpu.memory_space<vmem>>, vector<1x128xf32>
    %13 = arith.index_cast %c0_i32 : i32 to index
    %c0_2 = arith.constant 0 : index
    %14 = vector.load %arg6[%13, %c0_2] : memref<8x128xf32, #tpu.memory_space<vmem>>, vector<1x128xf32>
    tpu.vector_store %arg6[%13, %c0_2], %12 {strides = array<i32>} : memref<8x128xf32, #tpu.memory_space<vmem>>, vector<1x128xf32>,
    %c1_i32 = arith.constant 1 : i32
    %15 = arith.addi %0, %c1_i32 : i32
    %16 = arith.index_cast %15 : i32 to index
    %17 = memref.load %arg1[%16] : memref<8xi32, #tpu.memory_space<smem>>
    %18 = arith.addi %0, %c1_i32 : i32
    %19 = arith.index_cast %18 : i32 to index
    %20 = memref.load %arg2[%19] : memref<8xi32, #tpu.memory_space<smem>>
    %21 = arith.index_cast %17 : i32 to index
    %c0_3 = arith.constant 0 : index
    %22 = vector.load %arg3[%21, %c0_3] : memref<64x128xf32, #tpu.memory_space<vmem>>, vector<1x128xf32>
    %23 = arith.index_cast %c1_i32 : i32 to index
    %c0_4 = arith.constant 0 : index
    %24 = vector.load %arg5[%23, %c0_4] : memref<8x128xf32, #tpu.memory_space<vmem>>, vector<1x128xf32>
    tpu.vector_store %arg5[%23, %c0_4], %22 {strides = array<i32>} : memref<8x128xf32, #tpu.memory_space<vmem>>, vector<1x128xf32>,
    %25 = arith.index_cast %20 : i32 to index
    %c0_5 = arith.constant 0 : index
    %26 = vector.load %arg4[%25, %c0_5] : memref<96x128xf32, #tpu.memory_space<vmem>>, vector<1x128xf32>
    %27 = arith.index_cast %c1_i32 : i32 to index
    %c0_6 = arith.constant 0 : index
    %28 = vector.load %arg6[%27, %c0_6] : memref<8x128xf32, #tpu.memory_space<vmem>>, vector<1x128xf32>
    tpu.vector_store %arg6[%27, %c0_6], %26 {strides = array<i32>} : memref<8x128xf32, #tpu.memory_space<vmem>>, vector<1x128xf32>,
    %c2_i32 = arith.constant 2 : i32
    %29 = arith.addi %0, %c2_i32 : i32
    %30 = arith.index_cast %29 : i32 to index
    %31 = memref.load %arg1[%30] : memref<8xi32, #tpu.memory_space<smem>>
    %32 = arith.addi %0, %c2_i32 : i32
    %33 = arith.index_cast %32 : i32 to index
    %34 = memref.load %arg2[%33] : memref<8xi32, #tpu.memory_space<smem>>
    %35 = arith.index_cast %31 : i32 to index
    %c0_7 = arith.constant 0 : index
    %36 = vector.load %arg3[%35, %c0_7] : memref<64x128xf32, #tpu.memory_space<vmem>>, vector<1x128xf32>
    %37 = arith.index_cast %c2_i32 : i32 to index
    %c0_8 = arith.constant 0 : index
    %38 = vector.load %arg5[%37, %c0_8] : memref<8x128xf32, #tpu.memory_space<vmem>>, vector<1x128xf32>
    tpu.vector_store %arg5[%37, %c0_8], %36 {strides = array<i32>} : memref<8x128xf32, #tpu.memory_space<vmem>>, vector<1x128xf32>,
    %39 = arith.index_cast %34 : i32 to index
    %c0_9 = arith.constant 0 : index
    %40 = vector.load %arg4[%39, %c0_9] : memref<96x128xf32, #tpu.memory_space<vmem>>, vector<1x128xf32>
    %41 = arith.index_cast %c2_i32 : i32 to index
    %c0_10 = arith.constant 0 : index
    %42 = vector.load %arg6[%41, %c0_10] : memref<8x128xf32, #tpu.memory_space<vmem>>, vector<1x128xf32>
    tpu.vector_store %arg6[%41, %c0_10], %40 {strides = array<i32>} : memref<8x128xf32, #tpu.memory_space<vmem>>, vector<1x128xf32>,
    %c3_i32 = arith.constant 3 : i32
    %43 = arith.addi %0, %c3_i32 : i32
    %44 = arith.index_cast %43 : i32 to index
    %45 = memref.load %arg1[%44] : memref<8xi32, #tpu.memory_space<smem>>
    %46 = arith.addi %0, %c3_i32 : i32
    %47 = arith.index_cast %46 : i32 to index
    %48 = memref.load %arg2[%47] : memref<8xi32, #tpu.memory_space<smem>>
    %49 = arith.index_cast %45 : i32 to index
    %c0_11 = arith.constant 0 : index
    %50 = vector.load %arg3[%49, %c0_11] : memref<64x128xf32, #tpu.memory_space<vmem>>, vector<1x128xf32>
    %51 = arith.index_cast %c3_i32 : i32 to index
    %c0_12 = arith.constant 0 : index
    %52 = vector.load %arg5[%51, %c0_12] : memref<8x128xf32, #tpu.memory_space<vmem>>, vector<1x128xf32>
    tpu.vector_store %arg5[%51, %c0_12], %50 {strides = array<i32>} : memref<8x128xf32, #tpu.memory_space<vmem>>, vector<1x128xf32>,
    %53 = arith.index_cast %48 : i32 to index
    %c0_13 = arith.constant 0 : index
    %54 = vector.load %arg4[%53, %c0_13] : memref<96x128xf32, #tpu.memory_space<vmem>>, vector<1x128xf32>
    %55 = arith.index_cast %c3_i32 : i32 to index
    %c0_14 = arith.constant 0 : index
    %56 = vector.load %arg6[%55, %c0_14] : memref<8x128xf32, #tpu.memory_space<vmem>>, vector<1x128xf32>
    tpu.vector_store %arg6[%55, %c0_14], %54 {strides = array<i32>} : memref<8x128xf32, #tpu.memory_space<vmem>>, vector<1x128xf32>,
    %c4_i32 = arith.constant 4 : i32
    %57 = arith.addi %0, %c4_i32 : i32
    %58 = arith.index_cast %57 : i32 to index
    %59 = memref.load %arg1[%58] : memref<8xi32, #tpu.memory_space<smem>>
    %60 = arith.addi %0, %c4_i32 : i32
    %61 = arith.index_cast %60 : i32 to index
    %62 = memref.load %arg2[%61] : memref<8xi32, #tpu.memory_space<smem>>
    %63 = arith.index_cast %59 : i32 to index
    %c0_15 = arith.constant 0 : index
    %64 = vector.load %arg3[%63, %c0_15] : memref<64x128xf32, #tpu.memory_space<vmem>>, vector<1x128xf32>
    %65 = arith.index_cast %c4_i32 : i32 to index
    %c0_16 = arith.constant 0 : index
    %66 = vector.load %arg5[%65, %c0_16] : memref<8x128xf32, #tpu.memory_space<vmem>>, vector<1x128xf32>
    tpu.vector_store %arg5[%65, %c0_16], %64 {strides = array<i32>} : memref<8x128xf32, #tpu.memory_space<vmem>>, vector<1x128xf32>,
    %67 = arith.index_cast %62 : i32 to index
    %c0_17 = arith.constant 0 : index
    %68 = vector.load %arg4[%67, %c0_17] : memref<96x128xf32, #tpu.memory_space<vmem>>, vector<1x128xf32>
    %69 = arith.index_cast %c4_i32 : i32 to index
    %c0_18 = arith.constant 0 : index
    %70 = vector.load %arg6[%69, %c0_18] : memref<8x128xf32, #tpu.memory_space<vmem>>, vector<1x128xf32>
    tpu.vector_store %arg6[%69, %c0_18], %68 {strides = array<i32>} : memref<8x128xf32, #tpu.memory_space<vmem>>, vector<1x128xf32>,
    %c5_i32 = arith.constant 5 : i32
    %71 = arith.addi %0, %c5_i32 : i32
    %72 = arith.index_cast %71 : i32 to index
    %73 = memref.load %arg1[%72] : memref<8xi32, #tpu.memory_space<smem>>
    %74 = arith.addi %0, %c5_i32 : i32
    %75 = arith.index_cast %74 : i32 to index
    %76 = memref.load %arg2[%75] : memref<8xi32, #tpu.memory_space<smem>>
    %77 = arith.index_cast %73 : i32 to index
    %c0_19 = arith.constant 0 : index
    %78 = vector.load %arg3[%77, %c0_19] : memref<64x128xf32, #tpu.memory_space<vmem>>, vector<1x128xf32>
    %79 = arith.index_cast %c5_i32 : i32 to index
    %c0_20 = arith.constant 0 : index
    %80 = vector.load %arg5[%79, %c0_20] : memref<8x128xf32, #tpu.memory_space<vmem>>, vector<1x128xf32>
    tpu.vector_store %arg5[%79, %c0_20], %78 {strides = array<i32>} : memref<8x128xf32, #tpu.memory_space<vmem>>, vector<1x128xf32>,
    %81 = arith.index_cast %76 : i32 to index
    %c0_21 = arith.constant 0 : index
    %82 = vector.load %arg4[%81, %c0_21] : memref<96x128xf32, #tpu.memory_space<vmem>>, vector<1x128xf32>
    %83 = arith.index_cast %c5_i32 : i32 to index
    %c0_22 = arith.constant 0 : index
    %84 = vector.load %arg6[%83, %c0_22] : memref<8x128xf32, #tpu.memory_space<vmem>>, vector<1x128xf32>
    tpu.vector_store %arg6[%83, %c0_22], %82 {strides = array<i32>} : memref<8x128xf32, #tpu.memory_space<vmem>>, vector<1x128xf32>,
    %c6_i32 = arith.constant 6 : i32
    %85 = arith.addi %0, %c6_i32 : i32
    %86 = arith.index_cast %85 : i32 to index
    %87 = memref.load %arg1[%86] : memref<8xi32, #tpu.memory_space<smem>>
    %88 = arith.addi %0, %c6_i32 : i32
    %89 = arith.index_cast %88 : i32 to index
    %90 = memref.load %arg2[%89] : memref<8xi32, #tpu.memory_space<smem>>
    %91 = arith.index_cast %87 : i32 to index
    %c0_23 = arith.constant 0 : index
    %92 = vector.load %arg3[%91, %c0_23] : memref<64x128xf32, #tpu.memory_space<vmem>>, vector<1x128xf32>
    %93 = arith.index_cast %c6_i32 : i32 to index
    %c0_24 = arith.constant 0 : index
    %94 = vector.load %arg5[%93, %c0_24] : memref<8x128xf32, #tpu.memory_space<vmem>>, vector<1x128xf32>
    tpu.vector_store %arg5[%93, %c0_24], %92 {strides = array<i32>} : memref<8x128xf32, #tpu.memory_space<vmem>>, vector<1x128xf32>,
    %95 = arith.index_cast %90 : i32 to index
    %c0_25 = arith.constant 0 : index
    %96 = vector.load %arg4[%95, %c0_25] : memref<96x128xf32, #tpu.memory_space<vmem>>, vector<1x128xf32>
    %97 = arith.index_cast %c6_i32 : i32 to index
    %c0_26 = arith.constant 0 : index
    %98 = vector.load %arg6[%97, %c0_26] : memref<8x128xf32, #tpu.memory_space<vmem>>, vector<1x128xf32>
    tpu.vector_store %arg6[%97, %c0_26], %96 {strides = array<i32>} : memref<8x128xf32, #tpu.memory_space<vmem>>, vector<1x128xf32>,
    %c7_i32 = arith.constant 7 : i32
    %99 = arith.addi %0, %c7_i32 : i32
    %100 = arith.index_cast %99 : i32 to index
    %101 = memref.load %arg1[%100] : memref<8xi32, #tpu.memory_space<smem>>
    %102 = arith.addi %0, %c7_i32 : i32
    %103 = arith.index_cast %102 : i32 to index
    %104 = memref.load %arg2[%103] : memref<8xi32, #tpu.memory_space<smem>>
    %105 = arith.index_cast %101 : i32 to index
    %c0_27 = arith.constant 0 : index
    %106 = vector.load %arg3[%105, %c0_27] : memref<64x128xf32, #tpu.memory_space<vmem>>, vector<1x128xf32>
    %107 = arith.index_cast %c7_i32 : i32 to index
    %c0_28 = arith.constant 0 : index
    %108 = vector.load %arg5[%107, %c0_28] : memref<8x128xf32, #tpu.memory_space<vmem>>, vector<1x128xf32>
    tpu.vector_store %arg5[%107, %c0_28], %106 {strides = array<i32>} : memref<8x128xf32, #tpu.memory_space<vmem>>, vector<1x128xf32>,
    %109 = arith.index_cast %104 : i32 to index
    %c0_29 = arith.constant 0 : index
    %110 = vector.load %arg4[%109, %c0_29] : memref<96x128xf32, #tpu.memory_space<vmem>>, vector<1x128xf32>
    %111 = arith.index_cast %c7_i32 : i32 to index
    %c0_30 = arith.constant 0 : index
    %112 = vector.load %arg6[%111, %c0_30] : memref<8x128xf32, #tpu.memory_space<vmem>>, vector<1x128xf32>
    tpu.vector_store %arg6[%111, %c0_30], %110 {strides = array<i32>} : memref<8x128xf32, #tpu.memory_space<vmem>>, vector<1x128xf32>,
    %c8_i32_31 = arith.constant 8 : i32
    return
  }
  func.func @transform_0(%arg0: i32, %arg1: memref<8xi32, #tpu.memory_space<smem>>, %arg2: memref<8xi32, #tpu.memory_space<smem>>) -> (i32, i32) {
    %c0_i32 = arith.constant 0 : i32
    %c0_i32_0 = arith.constant 0 : i32
    %c0_i32_1 = arith.constant 0 : i32
    return %c0_i32, %c0_i32_0 : i32, i32
  }
  func.func @transform_1(%arg0: i32, %arg1: memref<8xi32, #tpu.memory_space<smem>>, %arg2: memref<8xi32, #tpu.memory_space<smem>>) -> (i32, i32) {
    %c0_i32 = arith.constant 0 : i32
    %c0_i32_0 = arith.constant 0 : i32
    %c0_i32_1 = arith.constant 0 : i32
    return %c0_i32, %c0_i32_0 : i32, i32
  }
  func.func @transform_2(%arg0: i32, %arg1: memref<8xi32, #tpu.memory_space<smem>>, %arg2: memref<8xi32, #tpu.memory_space<smem>>) -> (i32, i32) {
    %c0_i32 = arith.constant 0 : i32
    %c0_i32_0 = arith.constant 0 : i32
    return %arg0, %c0_i32 : i32, i32
  }
  func.func @transform_3(%arg0: i32, %arg1: memref<8xi32, #tpu.memory_space<smem>>, %arg2: memref<8xi32, #tpu.memory_space<smem>>) -> (i32, i32) {
    %c0_i32 = arith.constant 0 : i32
    %c0_i32_0 = arith.constant 0 : i32
    return %arg0, %c0_i32 : i32, i32
  }
}

</mosaic_0001>

<bundles_post_ra>
// kernel: tpu_custom_call.1
= control target key start
LH: loop header
LB: loop body
LE: loop exit
PB: predicated region body
PF: predicated region fallthrough
CT: control target
= control target key end

     0   :  { %s303_s18 = smov [#allocation3]   ;;  %s359_s0 = inlined_call_operand.hbm [shape: s32[8], index: 0, kind: input, shape index: {}]   ;;  %s360_s2 = inlined_call_operand.hbm [shape: f32[64,128], index: 2, kind: input, shape index: {}]   ;;  %s361_s3 = inlined_call_operand.hbm [shape: f32[96,128], index: 3, kind: input, shape index: {}]   ;;  %s362_s4 = inlined_call_operand.hbm [shape: f32[8,128], index: 4, kind: output, shape index: {0}]   ;;  %s363_s5 = inlined_call_operand.hbm [shape: f32[8,128], index: 5, kind: output, shape index: {1}]   ;;  %s364_s1 = inlined_call_operand.vmem [shape: s32[8], index: 1, kind: input, shape index: {}]  }
   0x1   :  { %12 = dma.hbm_to_smem %s359_s0, 16, %s303_s18, [#allocation2] }
   0x2   :  { %s13_s23 = sshll.u32 %s364_s1, 4  ;;  %s14_s23 = int_to_ptr.vmem [resolvable:$true] %s13_s23 }
   0x3   :  { %s201_s24 = scalar_lea.vmem %s14_s23, 16  ;;  %p206_p1 = scmp.lt.s32.totalorder %s14_s23, %s14_s23 }
   0x4   :  { %p202_p0 = scmp.ne.s32.totalorder %s14_s23, %s201_s24  ;;  %p207_p2 = scmp.lt.s32.totalorder %s201_s24, %s201_s24 }
   0x6   :  { %p208_p3 = por %p207_p2, %p206_p1 }
   0x8   :  { %p209_p4 = pnand %p208_p3, %p202_p0 }
   0xa   :  { %212 = shalt.err (!%p209_p4)  }
   0xb   :  { %s304_s25 = smov [#allocation4]  }
   0xc   :  { %16 = dma.vmem_to_smem %s14_s23, 16, %s304_s25, [#allocation2] }
   0xd   :  { %293 = dma.done.wait [#allocation2], 32 }
   0xe   :  { %294 = vsyncadd [#allocation2], 4294967264 }
   0xf   :  { %18 = sfence }
  0x10   :  { %19 = vsyncpa [#allocation6], 0 }
  0x11   :  { %20 = vsyncpa [#allocation9], 0 }
  0x12   :  { %21 = vsyncpa [#allocation7], 0 }
  0x13   :  { %22 = vsyncpa [#allocation12], 0  ;;  %s305_s0 = smov [#allocation5]  }
  0x14   :  { %s28_s26 = sshll.u32 %s305_s0, 4  ;;  %s29_s26 = int_to_ptr.vmem [resolvable:$true] %s28_s26 }
  0x15   :  { %s221_s1 = scalar_lea.vmem %s29_s26, 1024  ;;  %p226_p6 = scmp.lt.s32.totalorder %s29_s26, %s29_s26 }
  0x16   :  { %p222_p5 = scmp.ne.s32.totalorder %s29_s26, %s221_s1  ;;  %p227_p7 = scmp.lt.s32.totalorder %s221_s1, %s221_s1 }
  0x18   :  { %p228_p8 = por %p227_p7, %p226_p6 }
  0x1a   :  { %p229_p9 = pnand %p228_p8, %p222_p5 }
  0x1c   :  { %232 = shalt.err (!%p229_p9)
}
  0x1d   :  { %s306_s27 = smov 128   ;;  %s307_s28 = smov 8  }
  0x1e   :  { %34 = dma.hbm_to_vmem [thread:$0]  %s360_s2, 1024, %s29_s26, [#allocation6], %s306_s27, %s306_s27, %s307_s28  }
  0x1f   :  { %s308_s6 = smov [#allocation8]  }
  0x20   :  { %s40_s7 = sshll.u32 %s308_s6, 4  ;;  %s41_s7 = int_to_ptr.vmem [resolvable:$true] %s40_s7 }
  0x21   :  { %s241_s8 = scalar_lea.vmem %s41_s7, 1536  ;;  %p246_p11 = scmp.lt.s32.totalorder %s41_s7, %s41_s7 }
  0x22   :  { %p242_p10 = scmp.ne.s32.totalorder %s41_s7, %s241_s8  ;;  %p247_p12 = scmp.lt.s32.totalorder %s241_s8, %s241_s8 }
  0x24   :  { %p248_p13 = por %p247_p12, %p246_p11 }
  0x26   :  { %p249_p0 = pnand %p248_p13, %p242_p10 }
  0x28   :  { %252 = shalt.err (!%p249_p0)
}
  0x29   :  { %46 = dma.hbm_to_vmem [thread:$0]  %s361_s3, 1536, %s41_s7, [#allocation9], %s306_s27, %s306_s27, %s307_s28  }
  0x2a   :  { %295 = dma.done.wait [#allocation6], 1024  }
  0x2b   :  { %296 = vsyncadd [#allocation6], 4294966272 }
  0x2c   :  { %297 = dma.done.wait [#allocation9], 1536  }
  0x2d   :  { %298 = vsyncadd [#allocation9], 4294965760  ;;  %s54_s11 = sld [smem:[#allocation3]]  ;;  %s309_s9 = smov [#allocation10]  }
  0x2e   :  { %s55_s2 = sld [smem:[#allocation4]]  ;;  %s131_s10 = sshll.u32 %s309_s9, 4  ;;  %s132_s10 = int_to_ptr.vmem [resolvable:$true] %s131_s10 }
  0x2f   :  { %s171_s12 = sld [smem:[#allocation3 + $0x1]]  ;;  %p258_p2 = scmp.lt.s32.totalorder %s132_s10, %s132_s10 }
  0x30   :  { %s172_s13 = sld [smem:[#allocation4 + $0x1]] }
  0x31   :  { %s173_s14 = sld [smem:[#allocation3 + $0x2]] }
  0x32   :  { %s174_s15 = sld [smem:[#allocation4 + $0x2]] }
  0x33   :  { %s175_s16 = sld [smem:[#allocation3 + $0x3]]  ;;  %s56_s17 = scalar_lea.vmem [#allocation5], %s54_s11 }
  0x34   :  { %v57_v0 = vld [vmem:[%s56_s17] sm:$0x1]  ;;  %s176_s18 = sld [smem:[#allocation4 + $0x3]]  ;;  %s59_s19 = scalar_lea.vmem [#allocation8], %s55_s2 }
  0x35   :  { %58 = vst [vmem:[#allocation10] sm:$0x1] %v57_v0  ;;  %v60_v1 = vld [vmem:[%s59_s19] sm:$0x1]  ;;  %s177_s20 = sld [smem:[#allocation3 + $0x4]]  ;;  %s65_s3 = scalar_lea.vmem [#allocation5], %s171_s12 }
  0x36   :  { %61 = vst [vmem:[#allocation11] sm:$0x1] %v60_v1  ;;  %v66_v2 = vld [vmem:[%s65_s3] sm:$0x1]  ;;  %s178_s21 = sld [smem:[#allocation4 + $0x4]]  ;;  %s68_s22 = scalar_lea.vmem [#allocation8], %s172_s13 }
  0x37   :  { %67 = vst [vmem:[#allocation10 + $0x1] sm:$0x1] %v66_v2  ;;  %v69_v3 = vld [vmem:[%s68_s22] sm:$0x1]  ;;  %s179_s23 = sld [smem:[#allocation3 + $0x5]]  ;;  %s74_s24 = scalar_lea.vmem [#allocation5], %s173_s14 }
  0x38   :  { %70 = vst [vmem:[#allocation11 + $0x1] sm:$0x1] %v69_v3  ;;  %v75_v4 = vld [vmem:[%s74_s24] sm:$0x1]  ;;  %s180_s25 = sld [smem:[#allocation4 + $0x5]]  ;;  %s77_s0 = scalar_lea.vmem [#allocation8], %s174_s15 }
  0x39   :  { %76 = vst [vmem:[#allocation10 + $0x2] sm:$0x1] %v75_v4  ;;  %v78_v5 = vld [vmem:[%s77_s0] sm:$0x1]  ;;  %s181_s26 = sld [smem:[#allocation3 + $0x6]]  ;;  %s83_s1 = scalar_lea.vmem [#allocation5], %s175_s16 }
  0x3a   :  { %79 = vst [vmem:[#allocation11 + $0x2] sm:$0x1] %v78_v5  ;;  %v84_v6 = vld [vmem:[%s83_s1] sm:$0x1]  ;;  %s182_s27 = sld [smem:[#allocation4 + $0x6]]  ;;  %s86_s28 = scalar_lea.vmem [#allocation8], %s176_s18 }
  0x3b   :  { %85 = vst [vmem:[#allocation10 + $0x3] sm:$0x1] %v84_v6  ;;  %v87_v7 = vld [vmem:[%s86_s28] sm:$0x1]  ;;  %s183_s29 = sld [smem:[#allocation3 + $0x7]]  ;;  %s92_s30 = scalar_lea.vmem [#allocation5], %s177_s20 }
  0x3c   :  { %88 = vst [vmem:[#allocation11 + $0x3] sm:$0x1] %v87_v7  ;;  %v93_v8 = vld [vmem:[%s92_s30] sm:$0x1]  ;;  %s184_s6 = sld [smem:[#allocation4 + $0x7]]  ;;  %s95_s7 = scalar_lea.vmem [#allocation8], %s178_s21 }
  0x3d   :  { %94 = vst [vmem:[#allocation10 + $0x4] sm:$0x1] %v93_v8  ;;  %v96_v9 = vld [vmem:[%s95_s7] sm:$0x1]  ;;  %s101_s8 = scalar_lea.vmem [#allocation5], %s179_s23  ;;  %s310_s2 = smov [#allocation11]  }
  0x3e   :  { %97 = vst [vmem:[#allocation11 + $0x4] sm:$0x1] %v96_v9  ;;  %v102_v10 = vld [vmem:[%s101_s8] sm:$0x1]  ;;  %s104_s11 = scalar_lea.vmem [#allocation8], %s180_s25  ;;  %s141_s12 = sshll.u32 %s310_s2, 4  ;;  %s142_s12 = int_to_ptr.vmem [resolvable:$true] %s141_s12 }
  0x3f   :  { %103 = vst [vmem:[#allocation10 + $0x5] sm:$0x1] %v102_v10  ;;  %v105_v11 = vld [vmem:[%s104_s11] sm:$0x1]  ;;  %s110_s13 = scalar_lea.vmem [#allocation5], %s181_s26  ;;  %s253_s17 = scalar_lea.vmem %s132_s10, 128 }
  0x40   :  { %106 = vst [vmem:[#allocation11 + $0x5] sm:$0x1] %v105_v11  ;;  %v111_v12 = vld [vmem:[%s110_s13] sm:$0x1]  ;;  %s113_s14 = scalar_lea.vmem [#allocation8], %s182_s27  ;;  %p254_p1 = scmp.ne.s32.totalorder %s132_s10, %s253_s17 }
  0x41   :  { %112 = vst [vmem:[#allocation10 + $0x6] sm:$0x1] %v111_v12  ;;  %v114_v13 = vld [vmem:[%s113_s14] sm:$0x1]  ;;  %s119_s15 = scalar_lea.vmem [#allocation5], %s183_s29  ;;  %p259_p3 = scmp.lt.s32.totalorder %s253_s17, %s253_s17 }
  0x42   :  { %115 = vst [vmem:[#allocation11 + $0x6] sm:$0x1] %v114_v13  ;;  %v120_v14 = vld [vmem:[%s119_s15] sm:$0x1]  ;;  %s122_s16 = scalar_lea.vmem [#allocation8], %s184_s6 }
  0x43   :  { %121 = vst [vmem:[#allocation10 + $0x7] sm:$0x1] %v120_v14  ;;  %v123_v15 = vld [vmem:[%s122_s16] sm:$0x1]  ;;  %p260_p4 = por %p259_p3, %p258_p2 }
  0x44   :  { %124 = vst [vmem:[#allocation11 + $0x7] sm:$0x1] %v123_v15 }
  0x45   :  { %p261_p5 = pnand %p260_p4, %p254_p1 }
  0x47   :  { %264 = shalt.err (!%p261_p5)
}
  0x48   :  { %134 = dma.vmem_to_hbm [thread:$0]  %s132_s10, 128, %s362_s4, [#allocation7]  }
  0x49   :  { %s273_s20 = scalar_lea.vmem %s142_s12, 128  ;;  %p278_p7 = scmp.lt.s32.totalorder %s142_s12, %s142_s12 }
  0x4a   :  { %p274_p6 = scmp.ne.s32.totalorder %s142_s12, %s273_s20  ;;  %p279_p8 = scmp.lt.s32.totalorder %s273_s20, %s273_s20 }
  0x4c   :  { %p280_p9 = por %p279_p8, %p278_p7 }
  0x4e   :  { %p281_p10 = pnand %p280_p9, %p274_p6 }
  0x50   :  { %284 = shalt.err (!%p281_p10)
}
  0x51   :  { %144 = dma.vmem_to_hbm [thread:$0]  %s142_s12, 128, %s363_s5, [#allocation12]  }
  0x52   :  { %299 = dma.done.wait [#allocation7], 128  }
  0x53   :  { %300 = vsyncadd [#allocation7], 4294967168 }
  0x54   :  { %301 = dma.done.wait [#allocation12], 128  }
  0x55   :  { %302 = vsyncadd [#allocation12], 4294967168 }
  0x56   :  { %151 = vsyncpa [#allocation6], 1 }
  0x57   :  { %152 = vsyncpa [#allocation9], 1 }
  0x58   :  { %153 = vsyncpa [#allocation7], 1 }
  0x59   :  { %154 = vsyncpa [#allocation12], 1 }

</bundles_post_ra>
